<compile_context>
chip_gen: v7x
topology: tpu7x:2x2x1
jax: 0.10.0
libtpu: 0.0.40
codegen_flags: <defaults>
</compile_context>

<pallas_src>
import numpy as np
import jax
import jax.numpy as jnp
from jax.experimental import pallas as pl
from jax.experimental.pallas import tpu as pltpu

_LANE = 128
_TILE_BYTES_TARGET = 2 * 1024 * 1024   # ~2 MiB/block; 3 arrays x 2 bufs ~= 12 MiB VMEM
_VMEM_LIMIT_BYTES = 32 * 1024 * 1024


def _build_pe(embedding_dim: int, max_len: int = 5000) -> jnp.ndarray:
    """Sinusoidal positional-encoding table, shape (1, max_len, D) (matches PyTorch)."""
    pe = np.zeros((max_len, embedding_dim), dtype=np.float32)
    position = np.arange(0, max_len, dtype=np.float32)[:, None]
    div_term = np.exp(
        np.arange(0, embedding_dim, 2, dtype=np.float32)
        * (-np.log(10000.0) / embedding_dim)
    )
    pe[:, 0::2] = np.sin(position * div_term)
    if embedding_dim % 2 == 1:
        pe[:, 1::2] = np.cos(position * div_term[:-1])
    else:
        pe[:, 1::2] = np.cos(position * div_term)
    return jnp.asarray(pe)[None, :, :]


def _pe_add_kernel(x_ref, pe_ref, o_ref):
    # One VPU add on a (rows, lanes) tile; batch is a squeezed grid axis.
    o_ref[...] = x_ref[...] + pe_ref[...]


def _compiler_params():
    return pltpu.CompilerParams(
        dimension_semantics=("parallel", "parallel"),   # megacore-shardable on v7x
        vmem_limit_bytes=_VMEM_LIMIT_BYTES,
    )


def _tile_rows(requested, total, row_bytes):
    """Largest multiple of 8 <= min(requested-or-budget, total). Requires total >= 8."""
    if requested is None:
        requested = max(_TILE_BYTES_TARGET // row_bytes, 8)
    t = min(int(requested), total)
    return max((t // 8) * 8, 8)


def _pallas_lane_dense(x, pe, block_rows):
    """x folded to (B, L, 128), pe folded to (1, Lpe, 128); tile the row axis."""
    B, S, D = x.shape
    max_len = pe.shape[1]
    itemsize = jnp.dtype(x.dtype).itemsize
    L = (S * D) // _LANE
    Lpe = (max_len * D) // _LANE
    x2 = x.reshape(B, L, _LANE)          # row-major fold: layout-preserving reshape
    pe2 = pe.reshape(1, Lpe, _LANE)      # full table; BlockSpec windows the first L rows

    tl = _tile_rows(block_rows, L, _LANE * itemsize)
    grid = (B, pl.cdiv(L, tl))

    out2 = pl.pallas_call(
        _pe_add_kernel,
        out_shape=jax.ShapeDtypeStruct((B, L, _LANE), x.dtype),
        grid_spec=pltpu.PrefetchScalarGridSpec(
            num_scalar_prefetch=0,
            grid=grid,
            in_specs=[
                pl.BlockSpec((pl.Squeezed(), tl, _LANE), lambda b, t: (b, t, 0)),  # x
                pl.BlockSpec((pl.Squeezed(), tl, _LANE), lambda b, t: (0, t, 0)),  # pe
            ],
            out_specs=pl.BlockSpec((pl.Squeezed(), tl, _LANE), lambda b, t: (b, t, 0)),
        ),
        compiler_params=_compiler_params(),
    )(x2, pe2)
    return out2.reshape(B, S, D)


def _pallas_seq_tiled(x, pe, block_rows):
    """Generic path: tile the sequence axis of (B, S, D); last dim stays full-D."""
    B, S, D = x.shape
    itemsize = jnp.dtype(x.dtype).itemsize

    if S >= 8:
        ts = _tile_rows(block_rows, S, D * itemsize)
        pe_in = pe                                   # window directly into the full table
    else:
        ts = S
        # Tiny non-8-aligned S: make pe's block equal its full dims (negligible copy).
        pe_in = jax.lax.slice(pe, (0, 0, 0), (1, S, D))

    grid = (B, pl.cdiv(S, ts))

    return pl.pallas_call(
        _pe_add_kernel,
        out_shape=jax.ShapeDtypeStruct((B, S, D), x.dtype),
        grid_spec=pltpu.PrefetchScalarGridSpec(
            num_scalar_prefetch=0,
            grid=grid,
            in_specs=[
                pl.BlockSpec((pl.Squeezed(), ts, D), lambda b, t: (b, t, 0)),   # x
                pl.BlockSpec((pl.Squeezed(), ts, D), lambda b, t: (0, t, 0)),   # pe
            ],
            out_specs=pl.BlockSpec((pl.Squeezed(), ts, D), lambda b, t: (b, t, 0)),
        ),
        compiler_params=_compiler_params(),
    )(x, pe_in)


def s_positional_encoding(x, pe, *, block_rows=None, use_pallas=None):
    """out = x + pe[:, :S, :].  x: (B, S, D); pe: (1, max_len, D), max_len >= S."""
    B, S, D = x.shape
    max_len = pe.shape[1]

    if use_pallas is None:
        # A pallas_call has fixed launch / per-step overhead; let XLA fuse tiny adds.
        use_pallas = x.size * jnp.dtype(x.dtype).itemsize >= (1 << 20)
    if not use_pallas:
        return x + jax.lax.slice(pe, (0, 0, 0), (1, S, D))

    lane_foldable = (
        (S * D) % _LANE == 0
        and (max_len * D) % _LANE == 0
        and (S * D) // _LANE >= 8
    )
    if lane_foldable:
        return _pallas_lane_dense(x, pe, block_rows)
    return _pallas_seq_tiled(x, pe, block_rows)


if __name__ == "__main__":
    D = 200          # embedding_dim in the PyTorch script
    max_len = 256    # small table; semantics identical as long as S <= max_len

    key = jax.random.PRNGKey(0)
    k1, k2 = jax.random.split(key)
    pe = _build_pe(D, max_len)

    # Case 1: lane-dense path (S*D folds into 128-wide rows), multi-tile grid.
    B, S = 2, 128
    x = jax.random.normal(k1, (B, S, D), dtype=jnp.float32)
    out = jax.block_until_ready(
        s_positional_encoding(x, pe, block_rows=40, use_pallas=True)
    )
    np.testing.assert_allclose(
        np.asarray(out), np.asarray(x + pe[:, :S, :]), rtol=1e-6, atol=1e-6
    )

    # Case 2: seq-tiled fallback path (S*D not a multiple of 128 lanes).
    B2, S2 = 2, 40
    x2 = jax.random.normal(k2, (B2, S2, D), dtype=jnp.float32)
    out2 = jax.block_until_ready(s_positional_encoding(x2, pe, use_pallas=True))
    np.testing.assert_allclose(
        np.asarray(out2), np.asarray(x2 + pe[:, :S2, :]), rtol=1e-6, atol=1e-6
    )

    print("KERNEL_OK")
</pallas_src>

<mosaic_0001>
module attributes {stable_mosaic.version = 11 : i64} {
  func.func @_pe_add_kernel(%arg0: i32, %arg1: i32, %arg2: memref<1x40x128xf32, #tpu.memory_space<vmem>>, %arg3: memref<1x40x128xf32, #tpu.memory_space<vmem>>, %arg4: memref<1x40x128xf32, #tpu.memory_space<vmem>>) attributes {dimension_semantics = [#tpu.dimension_semantics<parallel>, #tpu.dimension_semantics<parallel>], iteration_bounds = array<i64: 2, 5>, scalar_prefetch = 0 : i64, scratch_operands = 0 : i64, tpu.core_type = #tpu.core_type<tc>, window_params = [{transform_indices = @transform_0, window_bounds = array<i64: 1, 40, 128>}, {transform_indices = @transform_1, window_bounds = array<i64: 1, 40, 128>}, {transform_indices = @transform_2, window_bounds = array<i64: 1, 40, 128>}]} {
    %c0 = arith.constant 0 : index
    %c0_0 = arith.constant 0 : index
    %c0_1 = arith.constant 0 : index
    %0 = vector.load %arg2[%c0, %c0_0, %c0_1] : memref<1x40x128xf32, #tpu.memory_space<vmem>>, vector<1x40x128xf32>
    %1 = vector.shape_cast %0 : vector<1x40x128xf32> to vector<40x128xf32>
    %c0_2 = arith.constant 0 : index
    %c0_3 = arith.constant 0 : index
    %c0_4 = arith.constant 0 : index
    %2 = vector.load %arg3[%c0_2, %c0_3, %c0_4] : memref<1x40x128xf32, #tpu.memory_space<vmem>>, vector<1x40x128xf32>
    %3 = vector.shape_cast %2 : vector<1x40x128xf32> to vector<40x128xf32>
    %4 = arith.addf %1, %3 : vector<40x128xf32>
    %c0_5 = arith.constant 0 : index
    %c0_6 = arith.constant 0 : index
    %c0_7 = arith.constant 0 : index
    %5 = vector.load %arg4[%c0_5, %c0_6, %c0_7] : memref<1x40x128xf32, #tpu.memory_space<vmem>>, vector<1x40x128xf32>
    %6 = vector.shape_cast %5 : vector<1x40x128xf32> to vector<40x128xf32>
    %7 = vector.shape_cast %4 : vector<40x128xf32> to vector<1x40x128xf32>
    tpu.vector_store %arg4[%c0_5, %c0_6, %c0_7], %7 {strides = array<i32>} : memref<1x40x128xf32, #tpu.memory_space<vmem>>, vector<1x40x128xf32>,
    return
  }
  func.func @transform_0(%arg0: i32, %arg1: i32) -> (i32, i32, i32) {
    %c0_i32 = arith.constant 0 : i32
    %c0_i32_0 = arith.constant 0 : i32
    return %arg0, %arg1, %c0_i32 : i32, i32, i32
  }
  func.func @transform_1(%arg0: i32, %arg1: i32) -> (i32, i32, i32) {
    %c0_i32 = arith.constant 0 : i32
    %c0_i32_0 = arith.constant 0 : i32
    %c0_i32_1 = arith.constant 0 : i32
    return %c0_i32, %arg1, %c0_i32_0 : i32, i32, i32
  }
  func.func @transform_2(%arg0: i32, %arg1: i32) -> (i32, i32, i32) {
    %c0_i32 = arith.constant 0 : i32
    %c0_i32_0 = arith.constant 0 : i32
    return %arg0, %arg1, %c0_i32 : i32, i32, i32
  }
}

</mosaic_0001>

<bundles_post_ra>
// kernel: tpu_custom_call.1
= control target key start
LH: loop header
LB: loop body
LE: loop exit
PB: predicated region body
PF: predicated region fallthrough
CT: control target
= control target key end

     0   :  { %7 = vsyncpa [#allocation3], 0  ;;  %s1029_s0 = inlined_call_operand.hbm [shape: f32[2,200,128], index: 0, kind: input, shape index: {}]   ;;  %s1030_s1 = inlined_call_operand.hbm [shape: f32[1,400,128], index: 1, kind: input, shape index: {}]   ;;  %s1031_s2 = inlined_call_operand.hbm [shape: f32[2,200,128], index: 2, kind: output, shape index: {}]  }
   0x1   :  { %9 = vsyncpa [#allocation3 + $0x1], 0 }
   0x2   :  { %10 = vsyncpa [#allocation6], 0 }
   0x3   :  { %12 = vsyncpa [#allocation6 + $0x1], 0 }
   0x4   :  { %13 = vsyncpa [#allocation4], 0 }
   0x5   :  { %15 = vsyncpa [#allocation4 + $0x1], 0  ;;  %s710_s9 = smov 0   ;;  %s712_s10 = smov 0  }
   0x6   :  { %s714_s11 = smov 0   ;;  %s716_s12 = smov 0  }
   0x7   :  { %s718_s13 = smov 0   ;;  %s720_s14 = smov 0  }
   0x8   :  { %s722_s15 = smov 0   ;;  %s724_s16 = smov 0  }
   0x9   :  { %s726_s17 = smov 0   ;;  %s728_s18 = smov 0  }
   0xa   :  { %s730_s19 = smov 0  }
   0xb LB: > { %1042 = sst [smem:[#allocation11_spill]] %s666_s14  ;;  %s372_s20 = sadd.s32 4294967295, %s686_s19   ;;  %s686_s19 = sphi %s730_s19, %s21_s19   ;;  %s682_s18 = sphi %s728_s18, %s1069_s18   ;;  %s678_s17 = sphi %s726_s17, %s1076_s17   ;;  %s674_s16 = sphi %s724_s16, %s1067_s16   ;;  %s670_s15 = sphi %s722_s15, %s1075_s15   ;;  %s666_s14 = sphi %s720_s14, %s1066_s14   ;;  %s662_s13 = sphi %s718_s13, %s1074_s13   ;;  %s658_s12 = sphi %s716_s12, %s1073_s12   ;;  %s654_s11 = sphi %s714_s11, %s1072_s11   ;;  %s650_s10 = sphi %s712_s10, %s1071_s10   ;;  %s646_s9 = sphi %s710_s9, %s1070_s9  }
   0xc   : > { %1043 = sst [smem:[#allocation12_spill]] %s682_s18  ;;  %s373_s21 = sadd.s32 4294967294, %s686_s19  }
   0xd   : > { %s30_s22 = sadd.s32 1, %s678_s17  ;;  %s33_s23 = sadd.s32 1, %s682_s18 }
   0xe   : > { %p31_p0 = scmp.ge.s32.totalorder %s30_s22, 5  ;;  %s42_s24 = sadd.s32 1, %s666_s14 }
   0xf   : > { %p49_p1 = scmp.ne.s32.totalorder %s666_s14, %s662_s13  ;;  %p1037_p2 = scmp.eq.s32.totalorder %s686_s19, 0 }
  0x10   : > { %s1078_s22 = smov (%p31_p0, %s30_s22), 0  ;;  %s1080_s23 = smov (!%p31_p0, %s33_s23), %s682_s18 }
  0x11   : > { %1044 = sst [smem:[#allocation13_spill]] %s1078_s22  ;;  %s778_s25 = ssub.s32 %s678_s17, %s1078_s22 }
  0x12   : > { %p785_p3 = por %p1037_p2, %p49_p1  ;;  %p35_p4 = scmp.ge.s32.totalorder %s1080_s23, 2 }
  0x13   : > { %p55_p5 = scmp.ne.s32.totalorder %s662_s13, %s658_s12  ;;  %p791_p6 = scmp.eq.s32.totalorder %s372_s20, 0 }
  0x14   : > { %s1082_s23 = smov (%p35_p4, %s1080_s23), 0  ;;  %p107_p9 = scmp.eq.s32.totalorder %s372_s20, 9 }
  0x15   : > { %1047 = sst [smem:[#allocation14_spill]] %s1082_s23  ;;  %p800_p8 = por %p791_p6, %p55_p5 }
  0x16   : > { %s37_s29 = ssub.s32 %s682_s18, %s1082_s23  ;;  %p113_p10 = scmp.eq.s32.totalorder %s373_s21, 9 }
  0x17   : > { %s1048_s28 = scalar_select %p800_p8, 1, 0 }
  0x18   : > { %s39_s30 = sor.u32 %s778_s25, %s37_s29  ;;  %p810_p11 = por %p107_p9, %p49_p1 }
  0x19   : > { %p40_p12 = scmp.eq.s32.totalorder %s39_s30, 0  ;;  %p814_p13 = por %p113_p10, %p55_p5 }
  0x1a   : > { %s1049_s3 = scalar_select %p810_p11, 1, 0 }
  0x1b   : > { %s1050_s4 = scalar_select %p814_p13, 1, 0 }
  0x1c   : > { %p1036_p0 = scmp.lt.s32.totalorder %s686_s19, 10  ;;  %s133_s6 = sand.u32 1, %s666_s14  }
  0x1d   : > { %s820_s5 = scalar_select %p40_p12, %s666_s14, %s42_s24  }
  0x1e   : > { %s138_s7 = smul.u32 5, %s678_s17  ;;  %p829_p4 = pnand %p1036_p0, %p785_p3 }
  0x1f   : > { %1051 = sst [smem:[#allocation15_spill]] %s820_s5  ;;  %s383_s8 = smul.u32 40, %s133_s6 }
  0x20   : > { %s384_s20 = smul.u32 25, %s682_s18  ;;  %s841_s26 = scalar_lea.sflag [#allocation3], %s133_s6 }
  0x21   : > { %s137_s30 = scalar_lea.vmem [#allocation2], %s383_s8  ;;  %p502_p5 = pneg %p829_p4 }
  0x22   : > { %s143_s29 = sadd.s32 %s384_s20, %s138_s7  ;;  %s146_s23 = sshll.u32 %s137_s30, 4  ;;  %s833_s23 = int_to_ptr.vmem [resolvable:$true] %s146_s23 }
  0x23   : > { %s376_s22 = sshll.u32 %s143_s29, 7 }
  0x24   : > { %s838_s14 = scalar_lea.hbm %s1029_s0, %s376_s22  ;;  %s505_s22 = scalar_lea.hbm %s1029_s0, 6400 }
  0x25   : > { %s500_s18 = scalar_lea.hbm %s838_s14, 640  ;;  %p506_p12 = scmp.lt.u32.totalorder %s838_s14, %s1029_s0 }
  0x26   : > { %p501_p3 = scmp.ne.s32.totalorder %s838_s14, %s500_s18  ;;  %p507_p0 = scmp.lt.u32.totalorder %s505_s22, %s500_s18 }
  0x27   : > { %p509_p7 = scmp.lt.u32.totalorder %s500_s18, %s838_s14 }
  0x28   : > { %p503_p9 = pnand %p502_p5, %p501_p3  ;;  %p508_p2 = por %p507_p0, %p506_p12 }
  0x2a   : > { %p504_p10 = pneg %p503_p9  ;;  %p510_p1 = por %p509_p7, %p508_p2 }
  0x2c   : > { %p511_p13 = pnand %p510_p1, %p504_p10 }
  0x2e   : > { %514 = shalt.err (!%p511_p13)
}
  0x2f   : > { %s515_s6 = scalar_lea.vmem %s833_s23, 640  ;;  %s688_s29 = smov [#allocation2]  }
  0x30   : > { %p516_p3 = scmp.ne.s32.totalorder %s833_s23, %s515_s6  ;;  %s520_s30 = sshll.u32 %s688_s29, 4  ;;  %s521_s30 = int_to_ptr.vmem [resolvable:$false] %s520_s30 }
  0x31   : > { %s522_s24 = scalar_lea.vmem %s521_s30, 1280  ;;  %p523_p8 = scmp.lt.s32.totalorder %s833_s23, %s521_s30 }
  0x32   : > { %p518_p9 = pnand %p516_p3, %p502_p5  ;;  %p524_p0 = scmp.lt.s32.totalorder %s522_s24, %s515_s6 }
  0x34   : > { %p519_p11 = pneg %p518_p9  ;;  %p525_p12 = por %p524_p0, %p523_p8 }
  0x36   : > { %p526_p2 = pnand %p525_p12, %p519_p11 }
  0x38   : > { %529 = shalt.err (!%p526_p2)
}
  0x39   : > { %s1040_s18 = smov 128   ;;  %s690_s7 = smov 8  }
  0x3a   : > { %398 = dma.hbm_to_vmem [thread:$0]  (!%p829_p4), %s838_s14, 640, %s833_s23, %s841_s26, %s1040_s18, %s1040_s18, %s690_s7  }
  0x3b   : > { %p175_p7 = scmp.lt.s32.totalorder %s686_s19, 11  ;;  %p1053_p8 = scmp.ge.s32.totalorder %s686_s19, 1 }
  0x3c   : > { %s68_s22 = sadd.s32 1, %s654_s11  ;;  %p75_p13 = scmp.ne.s32.totalorder %s654_s11, %s650_s10 }
  0x3d   : > { %p875_p11 = pnand %p1053_p8, %p175_p7  ;;  %p1055_p1 = scmp.eq.s32.totalorder %s778_s25, 0 }
  0x3e   : > { %p1056_p5 = scmp.eq.s32.totalorder %s686_s19, 0  ;;  %p81_p3 = scmp.ne.s32.totalorder %s650_s10, %s646_s9 }
  0x3f   : > { %s885_s5 = scalar_select %p1055_p1, %s654_s11, %s68_s22  }
  0x40   : > { %p77_p10 = por %p75_p13, %p1056_p5  ;;  %s156_s20 = sand.u32 1, %s654_s11  }
  0x41   : > { %s382_s21 = smul.u32 640, %s678_s17  ;;  %p895_p9 = por %p81_p3, %p791_p6 }
  0x42   : > { %s385_s14 = smul.u32 40, %s156_s20  ;;  %p1058_p4 = scmp.lt.s32.totalorder %s686_s19, 10 }
  0x43   : > { %s1057_s6 = scalar_select %p895_p9, 1, 0 }
  0x44   : > { %p901_p0 = pnand %p1058_p4, %p77_p10  ;;  %s908_s29 = scalar_lea.hbm %s1030_s1, %s382_s21 }
  0x45   : > { %s160_s9 = scalar_lea.vmem [#allocation5], %s385_s14  ;;  %s912_s30 = scalar_lea.sflag [#allocation6], %s156_s20 }
  0x46   : > { %s167_s27 = sshll.u32 %s160_s9, 4  ;;  %s530_s24 = scalar_lea.hbm %s908_s29, 640  ;;  %s910_s27 = int_to_ptr.vmem [resolvable:$true] %s167_s27 }
  0x47   : > { %p531_p6 = scmp.ne.s32.totalorder %s908_s29, %s530_s24  ;;  %p532_p12 = pneg %p901_p0 }
  0x48   : > { %s535_s26 = scalar_lea.hbm %s1030_s1, 6400  ;;  %p536_p8 = scmp.lt.u32.totalorder %s908_s29, %s1030_s1 }
  0x49   : > { %p533_p2 = pnand %p532_p12, %p531_p6  ;;  %p537_p13 = scmp.lt.u32.totalorder %s535_s26, %s530_s24 }
  0x4a   : > { %p539_p5 = scmp.lt.u32.totalorder %s530_s24, %s908_s29 }
  0x4b   : > { %p534_p7 = pneg %p533_p2  ;;  %p538_p1 = por %p537_p13, %p536_p8 }
  0x4d   : > { %p540_p10 = por %p539_p5, %p538_p1 }
  0x4f   : > { %p541_p3 = pnand %p540_p10, %p534_p7 }
  0x51   : > { %544 = shalt.err (!%p541_p3)
}
  0x52   : > { %s545_s20 = scalar_lea.vmem %s910_s27, 640  ;;  %s691_s14 = smov [#allocation5]  }
  0x53   : > { %p546_p4 = scmp.ne.s32.totalorder %s910_s27, %s545_s20  ;;  %s550_s9 = sshll.u32 %s691_s14, 4  ;;  %s551_s9 = int_to_ptr.vmem [resolvable:$false] %s550_s9 }
  0x54   : > { %s552_s18 = scalar_lea.vmem %s551_s9, 1280  ;;  %p553_p9 = scmp.lt.s32.totalorder %s910_s27, %s551_s9 }
  0x55   : > { %p548_p6 = pnand %p546_p4, %p532_p12  ;;  %p554_p8 = scmp.lt.s32.totalorder %s552_s18, %s545_s20 }
  0x57   : > { %p549_p2 = pneg %p548_p6  ;;  %p555_p13 = por %p554_p8, %p553_p9 }
  0x59   : > { %p556_p1 = pnand %p555_p13, %p549_p2 }
  0x5b   : > { %559 = shalt.err (!%p556_p1)
}
  0x5c   : > { %s1060_s24 = smov 128   ;;  %179 = sbr.rel (%p875_p11) target bundleno = 133 (0x85), region = 28 }
  0x5d   : > { %401 = dma.hbm_to_vmem [thread:$0]  (!%p901_p0), %s908_s29, 640, %s910_s27, %s912_s30, %s1060_s24, %s1060_s24, %s690_s7  }
  0x5e   : > { %s946_s22 = sand.u32 (!%p875_p11), 1, %s662_s13   ;;  %p1061_p9 = scmp.ne.s32.totalorder (!%p875_p11), %s1048_s28, 0 }
  0x5f   : > { %s386_s21 = smul.u32 (!%p875_p11), 40, %s946_s22  ;;  %s182_s26 = scalar_lea.sflag (!%p875_p11), [#allocation3], %s946_s22 }
  0x61   : > { %s185_s25 = scalar_lea.vmem (!%p875_p11), [#allocation2], %s386_s21 }
  0x63   : > { %633 = dma.done.wait (%p1061_p9), %s182_s26, 640  }
  0x64   : > { %635 = vsyncadd (%p1061_p9), %s182_s26, 4294966656  ;;  %s190_s7 = sand.u32 1, %s650_s10   ;;  %p1062_p11 = scmp.ne.s32.totalorder %s1057_s6, 0 }
  0x65   : > { %s387_s23 = smul.u32 40, %s190_s7  ;;  %s191_s8 = scalar_lea.sflag [#allocation6], %s190_s7 }
  0x67   : > { %s194_s29 = scalar_lea.vmem [#allocation5], %s387_s23 }
  0x68   : > { %637 = dma.done.wait (%p1062_p11), %s191_s8, 640  }
  0x69   : > { %639 = vsyncadd (%p1062_p11), %s191_s8, 4294966656  ;;  %s251_s27 = smul.u32 5, %s670_s15  ;;  %v223_v0 = vld [vmem:[%s185_s25] sm:$0xff]  ;;  %v228_v1 = vld [vmem:[%s194_s29] sm:$0xff]  ;;  %s219_s28 = scalar_lea.vmem [#allocation7], %s386_s21 }
  0x6a   : > { %s388_s30 = smul.u32 25, %s674_s16  ;;  %s259_s14 = sshll.u32 %s219_s28, 4  ;;  %v224_v2 = vld [vmem:[%s185_s25 + $0x8] sm:$0xff]  ;;  %v233_v3 = vadd.f32 %v228_v1, %v223_v0  ;;  %v229_v4 = vld [vmem:[%s194_s29 + $0x8] sm:$0xff]  ;;  %v225_v5 = vld [vmem:[%s185_s25 + $0x10] sm:$0xff]  ;;  %s961_s14 = int_to_ptr.vmem [resolvable:$true] %s259_s14 }
  0x6b   : > { %v230_v6 = vld [vmem:[%s194_s29 + $0x10] sm:$0xff]  ;;  %v234_v7 = vadd.f32 %v229_v4, %v224_v2  ;;  %v226_v9 = vld [vmem:[%s185_s25 + $0x18] sm:$0xff]  ;;  %v231_v10 = vld [vmem:[%s194_s29 + $0x18] sm:$0xff]  ;;  %s244_s18 = scalar_lea.sflag [#allocation4], %s946_s22  ;;  %s560_s24 = scalar_lea.vmem %s961_s14, 640 }
  0x6c   : > { %s256_s20 = sadd.s32 %s388_s30, %s251_s27  ;;  %v235_v8 = vadd.f32 %v230_v6, %v225_v5  ;;  %v227_v11 = vld [vmem:[%s185_s25 + $0x20] sm:$0xff]  ;;  %238 = vst [vmem:[%s219_s28] sm:$0xff] %v233_v3  ;;  %v236_v12 = vadd.f32 %v231_v10, %v226_v9  ;;  %v232_v13 = vld [vmem:[%s194_s29 + $0x20] sm:$0xff]  ;;  %p561_p0 = scmp.ne.s32.totalorder %s961_s14, %s560_s24 }
  0x6d   : > { %s379_s9 = sshll.u32 %s256_s20, 7  ;;  %239 = vst [vmem:[%s219_s28 + $0x8] sm:$0xff] %v234_v7  ;;  %v237_v14 = vadd.f32 %v232_v13, %v227_v11  ;;  %p1063_p12 = scmp.ne.s32.totalorder %s1049_s3, 0 }
  0x6e   : > { %240 = vst [vmem:[%s219_s28 + $0x10] sm:$0xff] %v235_v8  ;;  %s966_s6 = scalar_lea.hbm %s1031_s2, %s379_s9  ;;  %241 = vst [vmem:[%s219_s28 + $0x18] sm:$0xff] %v236_v12  ;;  %s692_s21 = smov [#allocation7]  }
  0x6f   : > { %242 = vst [vmem:[%s219_s28 + $0x20] sm:$0xff] %v237_v14  ;;  %p562_p7 = pnand %p561_p0, %p1063_p12  ;;  %s564_s26 = sshll.u32 %s692_s21, 4  ;;  %s565_s26 = int_to_ptr.vmem [resolvable:$false] %s564_s26 }
  0x70   : > { %s566_s25 = scalar_lea.vmem %s565_s26, 1280  ;;  %p567_p10 = scmp.lt.s32.totalorder %s961_s14, %s565_s26 }
  0x71   : > { %p563_p5 = pneg %p562_p7  ;;  %p568_p3 = scmp.lt.s32.totalorder %s566_s25, %s560_s24 }
  0x73   : > { %p569_p4 = por %p568_p3, %p567_p10 }
  0x75   : > { %p570_p6 = pnand %p569_p4, %p563_p5 }
  0x77   : > { %573 = shalt.err (!%p570_p6)
}
  0x78   : > { %s574_s7 = scalar_lea.hbm %s966_s6, 640  ;;  %s578_s29 = scalar_lea.hbm %s1031_s2, 6400 }
  0x79   : > { %p575_p2 = scmp.ne.s32.totalorder %s966_s6, %s574_s7  ;;  %p579_p1 = scmp.lt.u32.totalorder %s966_s6, %s1031_s2 }
  0x7a   : > { %p580_p9 = scmp.lt.u32.totalorder %s578_s29, %s574_s7  ;;  %p582_p0 = scmp.lt.u32.totalorder %s574_s7, %s966_s6 }
  0x7b   : > { %p576_p8 = pnand %p575_p2, %p1063_p12 }
  0x7c   : > { %p581_p11 = por %p580_p9, %p579_p1 }
  0x7d   : > { %p577_p13 = pneg %p576_p8 }
  0x7e   : > { %p583_p7 = por %p582_p0, %p581_p11 }
  0x80   : > { %p584_p5 = pnand %p583_p7, %p577_p13 }
  0x82   : > { %587 = shalt.err (!%p584_p5)
}
  0x83   : > { %s693_s20 = smov 128   ;;  %s694_s28 = smov 8  }
  0x84   : > { %393 = dma.vmem_to_hbm [thread:$0]  (%p1063_p12), %s961_s14, 640, %s966_s6, %s244_s18, %s693_s20, %s693_s20, %s694_s28  }
  0x85 PF: > { %p407_p10 = scmp.ge.s32.totalorder %s686_s19, 2  ;;  %s274_s9 = sand.u32 1, %s658_s12  }
  0x86   : > { %p1064_p3 = scmp.ne.s32.totalorder %s1050_s4, 0  ;;  %s275_s15 = scalar_lea.sflag [#allocation4], %s274_s9 }
  0x88   : > { %p403_p4 = pnand %p407_p10, %p1064_p3 }
  0x8a   : > { %641 = dma.done.wait (!%p403_p4), %s275_s15, 640  }
  0x8b   : > { %643 = vsyncadd (!%p403_p4), %s275_s15, 4294966656  ;;  %s21_s19 = sadd.s32 1, %s686_s19   ;;  %s1065_s3 = sld [smem:[#allocation11_spill]] }
  0x8c   : > { %p18_p6 = scmp.ge.s32.totalorder %s21_s19, 12   ;;  %s1066_s14 = sld [smem:[#allocation15_spill]] }
  0x8d   : > { %s1067_s16 = sld [smem:[#allocation12_spill]]  ;;  %s1068_s22 = sld [smem:[#allocation13_spill]] }
  0x8e   : > { %s1069_s18 = sld [smem:[#allocation14_spill]]  ;;  %s1070_s9 = smov %s650_s10 }
  0x8f   : > { %s1071_s10 = smov %s654_s11  ;;  %s1072_s11 = smov %s885_s5 }
  0x90   : > { %s1073_s12 = smov %s662_s13  ;;  %s1075_s15 = smov %s678_s17 }
  0x91   : > { %s1074_s13 = smov %s1065_s3  ;;  %20 = sbr.rel (!%p18_p6) target bundleno = 11 (0xb), region = 86 }
  0x93   : > { %s1076_s17 = smov %s1068_s22 }
  0x98   :  { %280 = vsyncpa [#allocation3], 1 }
  0x99   :  { %282 = vsyncpa [#allocation3 + $0x1], 1 }
  0x9a   :  { %283 = vsyncpa [#allocation6], 1 }
  0x9b   :  { %285 = vsyncpa [#allocation6 + $0x1], 1 }
  0x9c   :  { %286 = vsyncpa [#allocation4], 1 }
  0x9d   :  { %288 = vsyncpa [#allocation4 + $0x1], 1 }

</bundles_post_ra>
